<compile_context>
chip_gen: v5e
topology: v5e:2x2
jax: 0.10.0
libtpu: 0.0.40
codegen_flags: <defaults>
</compile_context>

<pallas_src>
import numpy as np
import jax
import jax.numpy as jnp
from jax.experimental import pallas as pl
from jax.experimental.pallas import tpu as pltpu

INPUT_DIM = 2
HIDDEN_DIMS = (32, 32)
N_COMPONENTS = 3
OUTPUT_DIM = 2 * N_COMPONENTS * 3  # 18
LN_EPS = 1e-5

H0, H1 = HIDDEN_DIMS

# ---- packed-parameter slab layout (all static offsets, weights 8-row aligned) ----
# slab: (80, 64) f32
#   rows 0:2   cols 0:32  -> w0   (2, 32)  masked layer-0 weight, transposed
#   rows 0:2   cols 32:64 -> aw0  (2, 32)  residual adapter weight, transposed
#   rows 8:40  cols 0:32  -> w1   (32, 32) masked layer-1 weight, transposed
#   rows 40:72 cols 0:18  -> wo   (32, 18) masked output weight, transposed
#   row 72: cols 0:32 -> b0 ; cols 32:64 -> ab0
#   row 73 -> g0, 74 -> beta0, 75 -> b1, 76 -> g1, 77 -> beta1, 78 cols 0:18 -> bo
SLAB_SHAPE = (80, 64)
R_W0 = 0
R_W1 = 8
R_WO = 40
R_B0 = 72
R_G0 = 73
R_BT0 = 74
R_B1 = 75
R_G1 = 76
R_BT1 = 77
R_BO = 78


def made_kernel(x_ref, p_ref, out_ref):
    x = x_ref[...]  # (tb, 2) f32

    def layer_norm(h, g, beta):
        mu = jnp.mean(h, axis=-1, keepdims=True)
        var = jnp.mean((h - mu) ** 2, axis=-1, keepdims=True)
        return (h - mu) * jax.lax.rsqrt(var + LN_EPS) * g + beta

    # ---- hidden layer 0 fused with residual adapter: x @ [w0 | aw0] + [b0 | ab0] ----
    # K=2 "matmul" done as two VPU broadcast-FMAs instead of an under-filled MXU push.
    h_cat = (x[:, 0:1] * p_ref[R_W0:R_W0 + 1, :]
             + x[:, 1:2] * p_ref[R_W0 + 1:R_W0 + 2, :]
             + p_ref[R_B0:R_B0 + 1, :])                      # (tb, 64)

    h = jnp.maximum(h_cat[:, 0:H0], 0.0)                     # relu(x @ w0 + b0)
    res = h_cat[:, H0:2 * H0]                                # x @ aw0 + ab0 (adapter)
    # TODO(synk): nn.Dropout is eval-mode identity here (inference semantics).
    h = layer_norm(h, p_ref[R_G0:R_G0 + 1, 0:H0], p_ref[R_BT0:R_BT0 + 1, 0:H0])
    h = h + res

    # ---- hidden layer 1: masked linear -> relu -> dropout(id) -> layernorm (no residual) ----
    w1 = p_ref[R_W1:R_W1 + H0, 0:H1]                         # (32, 32)
    h2 = jnp.dot(h, w1, preferred_element_type=jnp.float32) + p_ref[R_B1:R_B1 + 1, 0:H1]
    h2 = jnp.maximum(h2, 0.0)
    h2 = layer_norm(h2, p_ref[R_G1:R_G1 + 1, 0:H1], p_ref[R_BT1:R_BT1 + 1, 0:H1])

    # ---- masked output layer ----
    wo = p_ref[R_WO:R_WO + H1, 0:OUTPUT_DIM]                 # (32, 18)
    out = jnp.dot(h2, wo, preferred_element_type=jnp.float32) + p_ref[R_BO:R_BO + 1, 0:OUTPUT_DIM]
    out_ref[...] = out


def _round_up(n, m):
    return ((n + m - 1) // m) * m


def made_forward(x2d, slab, tb=None):
    """x2d: (B, INPUT_DIM) f32. slab: packed (80, 64) params. Returns (B, OUTPUT_DIM)."""
    B = x2d.shape[0]
    if tb is None:
        # Large tile amortizes the ~0.35us per-grid-step overhead (which otherwise
        # rivals this kernel's per-tile compute).  2048 rows keeps the lane-padded
        # x / out blocks at ~4 MiB total (double-buffered) -- safe on every chip's
        # default scoped-VMEM limit -- and batches >= 4096 still give >= 2
        # "parallel" steps for megacore sharding on v7x.
        tb = min(2048, _round_up(max(B, 1), 8))
    Bp = _round_up(B, tb)
    if Bp != B:
        x2d = jnp.pad(x2d, ((0, Bp - B), (0, 0)))

    out = pl.pallas_call(
        made_kernel,
        out_shape=jax.ShapeDtypeStruct((Bp, OUTPUT_DIM), jnp.float32),
        grid_spec=pl.GridSpec(
            grid=(Bp // tb,),
            in_specs=[
                pl.BlockSpec((tb, INPUT_DIM), lambda i: (i, 0)),
                pl.BlockSpec(SLAB_SHAPE, lambda i: (0, 0)),   # single resident param slab
            ],
            out_specs=pl.BlockSpec((tb, OUTPUT_DIM), lambda i: (i, 0)),
        ),
        compiler_params=pltpu.CompilerParams(dimension_semantics=("parallel",)),
    )(x2d, slab)

    if Bp != B:
        out = out[:B]
    return out


# ---------------- deterministic parameter construction (mirrors MADE.__init__) ----------------

def _uniform_linear(rng, out_dim, in_dim):
    bound = 1.0 / np.sqrt(in_dim)
    w = rng.uniform(-bound, bound, size=(out_dim, in_dim)).astype(np.float32)
    b = rng.uniform(-bound, bound, size=(out_dim,)).astype(np.float32)
    return w, b


def init_params(seed=0):
    rng = np.random.default_rng(seed)
    params = {}
    prev_dim = INPUT_DIM
    prev_order = np.arange(INPUT_DIM)

    for li, h_dim in enumerate(HIDDEN_DIMS):
        w, b = _uniform_linear(rng, h_dim, prev_dim)
        curr_order = rng.permutation(h_dim) % INPUT_DIM
        mask = (prev_order[None, :] < curr_order[:, None]).astype(np.float32)  # (h_dim, prev_dim)
        w = w * mask
        params[f'w{li}'] = jnp.asarray(w.T)                 # (prev_dim, h_dim)
        params[f'b{li}'] = jnp.asarray(b[None, :])          # (1, h_dim)
        params[f'g{li}'] = jnp.ones((1, h_dim), jnp.float32)
        params[f'beta{li}'] = jnp.zeros((1, h_dim), jnp.float32)
        if prev_dim != h_dim:  # residual adapter exists (only layer 0 here)
            aw, ab = _uniform_linear(rng, h_dim, prev_dim)
            params[f'aw{li}'] = jnp.asarray(aw.T)
            params[f'ab{li}'] = jnp.asarray(ab[None, :])
        prev_dim = h_dim
        prev_order = curr_order

    wo, bo = _uniform_linear(rng, OUTPUT_DIM, prev_dim)
    mask = np.zeros((OUTPUT_DIM, prev_dim), np.float32)
    for d in range(2):
        for c in range(N_COMPONENTS):
            mean_idx = d * N_COMPONENTS * 3 + c
            log_std_idx = d * N_COMPONENTS * 3 + N_COMPONENTS + c
            weight_idx = d * N_COMPONENTS * 3 + 2 * N_COMPONENTS + c
            for idx in (mean_idx, log_std_idx, weight_idx):
                mask[idx, prev_order <= d] = 1.0
    wo = wo * mask
    params['wo'] = jnp.asarray(wo.T)       # (prev_dim, OUTPUT_DIM)
    params['bo'] = jnp.asarray(bo[None, :])
    return params


def pack_params(params):
    """Pack the 12 small parameter tensors into one contiguous (80, 64) slab."""
    slab = np.zeros(SLAB_SHAPE, np.float32)
    slab[R_W0:R_W0 + INPUT_DIM, 0:H0] = np.asarray(params['w0'])
    slab[R_W0:R_W0 + INPUT_DIM, H0:2 * H0] = np.asarray(params['aw0'])
    slab[R_W1:R_W1 + H0, 0:H1] = np.asarray(params['w1'])
    slab[R_WO:R_WO + H1, 0:OUTPUT_DIM] = np.asarray(params['wo'])
    slab[R_B0, 0:H0] = np.asarray(params['b0'])[0]
    slab[R_B0, H0:2 * H0] = np.asarray(params['ab0'])[0]
    slab[R_G0, 0:H0] = np.asarray(params['g0'])[0]
    slab[R_BT0, 0:H0] = np.asarray(params['beta0'])[0]
    slab[R_B1, 0:H1] = np.asarray(params['b1'])[0]
    slab[R_G1, 0:H1] = np.asarray(params['g1'])[0]
    slab[R_BT1, 0:H1] = np.asarray(params['beta1'])[0]
    slab[R_BO, 0:OUTPUT_DIM] = np.asarray(params['bo'])[0]
    return jnp.asarray(slab)


# ---------------- pure-JAX reference for sanity check ----------------

def made_reference(x, p):
    def ln(h, g, beta):
        mu = h.mean(-1, keepdims=True)
        var = ((h - mu) ** 2).mean(-1, keepdims=True)
        return (h - mu) / jnp.sqrt(var + LN_EPS) * g + beta

    residual = x
    h = jnp.maximum(x @ p['w0'] + p['b0'], 0.0)
    h = ln(h, p['g0'], p['beta0'])
    h = h + (residual @ p['aw0'] + p['ab0'])

    h2 = jnp.maximum(h @ p['w1'] + p['b1'], 0.0)
    h2 = ln(h2, p['g1'], p['beta1'])

    return h2 @ p['wo'] + p['bo']


if __name__ == "__main__":
    params = init_params(seed=0)
    slab = pack_params(params)

    # Small example input, same semantics as torch: x.view(-1, input_dim).
    key = jax.random.PRNGKey(0)
    x = jax.random.normal(key, (4, 2, 2), dtype=jnp.float32)
    x2d = x.reshape(-1, INPUT_DIM)                            # (8, 2)

    out = jax.block_until_ready(made_forward(x2d, slab))
    ref = made_reference(x2d, params)
    assert out.shape == (x2d.shape[0], OUTPUT_DIM)
    np.testing.assert_allclose(np.asarray(out), np.asarray(ref), rtol=1e-5, atol=1e-5)

    # Ragged-batch path (exercises wrapper padding + slice).
    x_rag = jax.random.normal(jax.random.PRNGKey(1), (37, INPUT_DIM), dtype=jnp.float32)
    out_rag = jax.block_until_ready(made_forward(x_rag, slab))
    np.testing.assert_allclose(np.asarray(out_rag),
                               np.asarray(made_reference(x_rag, params)),
                               rtol=1e-5, atol=1e-5)

    # Multi-tile path (>= 2 grid steps + padding of the last tile).
    x_big = jax.random.normal(jax.random.PRNGKey(2), (2500, INPUT_DIM), dtype=jnp.float32)
    out_big = jax.block_until_ready(made_forward(x_big, slab))
    np.testing.assert_allclose(np.asarray(out_big),
                               np.asarray(made_reference(x_big, params)),
                               rtol=1e-5, atol=1e-5)

    print("KERNEL_OK")
</pallas_src>

<mosaic_0001>
module attributes {stable_mosaic.version = 11 : i64} {
  func.func @made_kernel(%arg0: i32, %arg1: memref<8x2xf32, #tpu.memory_space<vmem>>, %arg2: memref<80x64xf32, #tpu.memory_space<vmem>>, %arg3: memref<8x18xf32, #tpu.memory_space<vmem>>) attributes {dimension_semantics = [#tpu.dimension_semantics<parallel>], iteration_bounds = array<i64: 1>, scalar_prefetch = 0 : i64, scratch_operands = 0 : i64, tpu.core_type = #tpu.core_type<tc>, window_params = [{transform_indices = @transform_0, window_bounds = array<i64: 8, 2>}, {pipeline_mode = #tpu.pipeline_mode<synchronous>, transform_indices = @transform_1, window_bounds = array<i64: 80, 64>}, {transform_indices = @transform_2, window_bounds = array<i64: 8, 18>}]} {
    %c0 = arith.constant 0 : index
    %c0_0 = arith.constant 0 : index
    %0 = vector.load %arg1[%c0, %c0_0] : memref<8x2xf32, #tpu.memory_space<vmem>>, vector<8x2xf32>
    %1 = vector.extract_strided_slice %0 {offsets = [0, 0], sizes = [8, 1], strides = [1, 1]} : vector<8x2xf32> to vector<8x1xf32>
    %c0_1 = arith.constant 0 : index
    %c0_2 = arith.constant 0 : index
    %2 = vector.load %arg2[%c0_1, %c0_2] : memref<80x64xf32, #tpu.memory_space<vmem>>, vector<1x64xf32>
    %3 = vector.broadcast %1 : vector<8x1xf32> to vector<8x64xf32>
    %4 = vector.broadcast %2 : vector<1x64xf32> to vector<8x64xf32>
    %5 = arith.mulf %3, %4 : vector<8x64xf32>
    %6 = vector.extract_strided_slice %0 {offsets = [0, 1], sizes = [8, 1], strides = [1, 1]} : vector<8x2xf32> to vector<8x1xf32>
    %c1 = arith.constant 1 : index
    %c0_3 = arith.constant 0 : index
    %7 = vector.load %arg2[%c1, %c0_3] : memref<80x64xf32, #tpu.memory_space<vmem>>, vector<1x64xf32>
    %8 = vector.broadcast %6 : vector<8x1xf32> to vector<8x64xf32>
    %9 = vector.broadcast %7 : vector<1x64xf32> to vector<8x64xf32>
    %10 = arith.mulf %8, %9 : vector<8x64xf32>
    %11 = arith.addf %5, %10 : vector<8x64xf32>
    %c72 = arith.constant 72 : index
    %c0_4 = arith.constant 0 : index
    %12 = vector.load %arg2[%c72, %c0_4] : memref<80x64xf32, #tpu.memory_space<vmem>>, vector<1x64xf32>
    %13 = vector.broadcast %12 : vector<1x64xf32> to vector<8x64xf32>
    %14 = arith.addf %11, %13 : vector<8x64xf32>
    %15 = vector.extract_strided_slice %14 {offsets = [0, 0], sizes = [8, 32], strides = [1, 1]} : vector<8x64xf32> to vector<8x32xf32>
    %cst = arith.constant 0.000000e+00 : f32
    %16 = vector.broadcast %cst : f32 to vector<8x32xf32>
    %17 = arith.maximumf %15, %16 : vector<8x32xf32>
    %18 = vector.extract_strided_slice %14 {offsets = [0, 32], sizes = [8, 32], strides = [1, 1]} : vector<8x64xf32> to vector<8x32xf32>
    %c73 = arith.constant 73 : index
    %c0_5 = arith.constant 0 : index
    %19 = vector.load %arg2[%c73, %c0_5] : memref<80x64xf32, #tpu.memory_space<vmem>>, vector<1x32xf32>
    %c74 = arith.constant 74 : index
    %c0_6 = arith.constant 0 : index
    %20 = vector.load %arg2[%c74, %c0_6] : memref<80x64xf32, #tpu.memory_space<vmem>>, vector<1x32xf32>
    %cst_7 = arith.constant dense<0.000000e+00> : vector<8xf32>
    %21 = vector.multi_reduction <add>, %17, %cst_7 [1] : vector<8x32xf32> to vector<8xf32>
    %22 = vector.shape_cast %21 : vector<8xf32> to vector<8x1xf32>
    %cst_8 = arith.constant 3.200000e+01 : f32
    %23 = vector.broadcast %cst_8 : f32 to vector<8x1xf32>
    %24 = arith.divf %22, %23 : vector<8x1xf32>
    %25 = vector.broadcast %24 : vector<8x1xf32> to vector<8x32xf32>
    %26 = arith.subf %17, %25 : vector<8x32xf32>
    %27 = arith.mulf %26, %26 : vector<8x32xf32>
    %cst_9 = arith.constant dense<0.000000e+00> : vector<8xf32>
    %28 = vector.multi_reduction <add>, %27, %cst_9 [1] : vector<8x32xf32> to vector<8xf32>
    %29 = vector.shape_cast %28 : vector<8xf32> to vector<8x1xf32>
    %cst_10 = arith.constant 3.200000e+01 : f32
    %30 = vector.broadcast %cst_10 : f32 to vector<8x1xf32>
    %31 = arith.divf %29, %30 : vector<8x1xf32>
    %32 = vector.broadcast %24 : vector<8x1xf32> to vector<8x32xf32>
    %33 = arith.subf %17, %32 : vector<8x32xf32>
    %cst_11 = arith.constant 9.99999974E-6 : f32
    %34 = vector.broadcast %cst_11 : f32 to vector<8x1xf32>
    %35 = arith.addf %31, %34 : vector<8x1xf32>
    %36 = math.rsqrt %35 : vector<8x1xf32>
    %37 = vector.broadcast %36 : vector<8x1xf32> to vector<8x32xf32>
    %38 = arith.mulf %33, %37 : vector<8x32xf32>
    %39 = vector.broadcast %19 : vector<1x32xf32> to vector<8x32xf32>
    %40 = arith.mulf %38, %39 : vector<8x32xf32>
    %41 = vector.broadcast %20 : vector<1x32xf32> to vector<8x32xf32>
    %42 = arith.addf %40, %41 : vector<8x32xf32>
    %43 = arith.addf %42, %18 : vector<8x32xf32>
    %c8 = arith.constant 8 : index
    %c0_12 = arith.constant 0 : index
    %44 = vector.load %arg2[%c8, %c0_12] : memref<80x64xf32, #tpu.memory_space<vmem>>, vector<32x32xf32>
    %cst_13 = arith.constant dense<0.000000e+00> : vector<8x32xf32>
    %45 = tpu.matmul %43, %44, %cst_13 {dimension_numbers = #tpu.dot_dimension_numbers<[1], [0], [0], [1], [0, 0, 1, 1], [], []>} : vector<8x32xf32>, vector<32x32xf32>, vector<8x32xf32> -> vector<8x32xf32>
    %c75 = arith.constant 75 : index
    %c0_14 = arith.constant 0 : index
    %46 = vector.load %arg2[%c75, %c0_14] : memref<80x64xf32, #tpu.memory_space<vmem>>, vector<1x32xf32>
    %47 = vector.broadcast %46 : vector<1x32xf32> to vector<8x32xf32>
    %48 = arith.addf %45, %47 : vector<8x32xf32>
    %cst_15 = arith.constant 0.000000e+00 : f32
    %49 = vector.broadcast %cst_15 : f32 to vector<8x32xf32>
    %50 = arith.maximumf %48, %49 : vector<8x32xf32>
    %c76 = arith.constant 76 : index
    %c0_16 = arith.constant 0 : index
    %51 = vector.load %arg2[%c76, %c0_16] : memref<80x64xf32, #tpu.memory_space<vmem>>, vector<1x32xf32>
    %c77 = arith.constant 77 : index
    %c0_17 = arith.constant 0 : index
    %52 = vector.load %arg2[%c77, %c0_17] : memref<80x64xf32, #tpu.memory_space<vmem>>, vector<1x32xf32>
    %cst_18 = arith.constant dense<0.000000e+00> : vector<8xf32>
    %53 = vector.multi_reduction <add>, %50, %cst_18 [1] : vector<8x32xf32> to vector<8xf32>
    %54 = vector.shape_cast %53 : vector<8xf32> to vector<8x1xf32>
    %cst_19 = arith.constant 3.200000e+01 : f32
    %55 = vector.broadcast %cst_19 : f32 to vector<8x1xf32>
    %56 = arith.divf %54, %55 : vector<8x1xf32>
    %57 = vector.broadcast %56 : vector<8x1xf32> to vector<8x32xf32>
    %58 = arith.subf %50, %57 : vector<8x32xf32>
    %59 = arith.mulf %58, %58 : vector<8x32xf32>
    %cst_20 = arith.constant dense<0.000000e+00> : vector<8xf32>
    %60 = vector.multi_reduction <add>, %59, %cst_20 [1] : vector<8x32xf32> to vector<8xf32>
    %61 = vector.shape_cast %60 : vector<8xf32> to vector<8x1xf32>
    %cst_21 = arith.constant 3.200000e+01 : f32
    %62 = vector.broadcast %cst_21 : f32 to vector<8x1xf32>
    %63 = arith.divf %61, %62 : vector<8x1xf32>
    %64 = vector.broadcast %56 : vector<8x1xf32> to vector<8x32xf32>
    %65 = arith.subf %50, %64 : vector<8x32xf32>
    %cst_22 = arith.constant 9.99999974E-6 : f32
    %66 = vector.broadcast %cst_22 : f32 to vector<8x1xf32>
    %67 = arith.addf %63, %66 : vector<8x1xf32>
    %68 = math.rsqrt %67 : vector<8x1xf32>
    %69 = vector.broadcast %68 : vector<8x1xf32> to vector<8x32xf32>
    %70 = arith.mulf %65, %69 : vector<8x32xf32>
    %71 = vector.broadcast %51 : vector<1x32xf32> to vector<8x32xf32>
    %72 = arith.mulf %70, %71 : vector<8x32xf32>
    %73 = vector.broadcast %52 : vector<1x32xf32> to vector<8x32xf32>
    %74 = arith.addf %72, %73 : vector<8x32xf32>
    %c40 = arith.constant 40 : index
    %c0_23 = arith.constant 0 : index
    %75 = vector.load %arg2[%c40, %c0_23] : memref<80x64xf32, #tpu.memory_space<vmem>>, vector<32x18xf32>
    %cst_24 = arith.constant dense<0.000000e+00> : vector<8x18xf32>
    %76 = tpu.matmul %74, %75, %cst_24 {dimension_numbers = #tpu.dot_dimension_numbers<[1], [0], [0], [1], [0, 0, 1, 1], [], []>} : vector<8x32xf32>, vector<32x18xf32>, vector<8x18xf32> -> vector<8x18xf32>
    %c78 = arith.constant 78 : index
    %c0_25 = arith.constant 0 : index
    %77 = vector.load %arg2[%c78, %c0_25] : memref<80x64xf32, #tpu.memory_space<vmem>>, vector<1x18xf32>
    %78 = vector.broadcast %77 : vector<1x18xf32> to vector<8x18xf32>
    %79 = arith.addf %76, %78 : vector<8x18xf32>
    %c0_26 = arith.constant 0 : index
    %c0_27 = arith.constant 0 : index
    %80 = vector.load %arg3[%c0_26, %c0_27] : memref<8x18xf32, #tpu.memory_space<vmem>>, vector<8x18xf32>
    tpu.vector_store %arg3[%c0_26, %c0_27], %79 {strides = array<i32>} : memref<8x18xf32, #tpu.memory_space<vmem>>, vector<8x18xf32>,
    return
  }
  func.func @transform_0(%arg0: i32) -> (i32, i32) {
    %c0_i32 = arith.constant 0 : i32
    %c0_i32_0 = arith.constant 0 : i32
    return %arg0, %c0_i32 : i32, i32
  }
  func.func @transform_1(%arg0: i32) -> (i32, i32) {
    %c0_i32 = arith.constant 0 : i32
    %c0_i32_0 = arith.constant 0 : i32
    %c0_i32_1 = arith.constant 0 : i32
    return %c0_i32, %c0_i32_0 : i32, i32
  }
  func.func @transform_2(%arg0: i32) -> (i32, i32) {
    %c0_i32 = arith.constant 0 : i32
    %c0_i32_0 = arith.constant 0 : i32
    return %arg0, %c0_i32 : i32, i32
  }
}

</mosaic_0001>

<bundles_post_ra>
// kernel: tpu_custom_call.1
= control target key start
LH: loop header
LB: loop body
LE: loop exit
PB: predicated region body
PF: predicated region fallthrough
CT: control target
= control target key end

     0   :  { %v229_v1 = vmov 0   ;;  %s312_s0 = inlined_call_operand.vmem [shape: f32[8,2], index: 0, kind: input, shape index: {}]   ;;  %s313_s1 = inlined_call_operand.vmem [shape: f32[80,64], index: 1, kind: input, shape index: {}]   ;;  %s314_s2 = inlined_call_operand.hbm [shape: f32[8,18], index: 2, kind: output, shape index: {}]  }
   0x1   :  { %v12_v0 = vld [vmem:[%s312_s0] sm:$0xff]  ;;  %186 = vset.pattern.permute.xlu0 %v229_v1 }
   0x2   :  { %16 = vperm.xlu0 %186, %v12_v0  }
   0x3   :  { %7 = vsyncpa [#allocation3], 0  ;;  %v230_v2 = vmov 1   ;;  %v188_v4 = vld [vmem:[%s313_s1] ss:$0 sm:$0xff]  ;;  %vm35_vm0 = vcmask 261120  }
   0x4   :  { %v189_v5 = vld [vmem:[%s313_s1 + $0x1] ss:$0 sm:$0xff]  ;;  %v190_v9 = vld [vmem:[%s313_s1 + $0x48] ss:$0 sm:$0xff]  ;;  %s231_s16 = smov 96   ;;  %v232_v14 = vmov 32.0  }
   0x5   :  { %197 = vrcp.f32 %v232_v14  ;;  %v77_v26 = vld [vmem:[%s313_s1 + $0x20] sm:$0xff]  ;;  %v76_v27 = vld [vmem:[%s313_s1 + $0x18] sm:$0xff]  ;;  %v75_v28 = vld [vmem:[%s313_s1 + $0x10] sm:$0xff]  ;;  %s170_s20 = sshll.u32 %s314_s2, 4  ;;  %vm161_vm8 = vcmask 146432   ;;  %s171_s20 = int_to_ptr.hbm [resolvable:$true] %s170_s20 }
   0x6   :  { %95 = vmatpush.msra.mxu0 %v77_v26  ;;  %v74_v29 = vld [vmem:[%s313_s1 + $0x8] sm:$0xff]  ;;  %v135_v57 = vld [vmem:[%s313_s1 + $0x40] sm:$0xff]  ;;  %v134_v58 = vld [vmem:[%s313_s1 + $0x38] sm:$0xff] }
   0x7   :  { %v191_v39 = vld [vmem:[%s313_s1 + $0x49] ss:$0 sm:$0xff]  ;;  %v192_v42 = vld [vmem:[%s313_s1 + $0x4a] ss:$0 sm:$0xff]  ;;  %v193_v47 = vld [vmem:[%s313_s1 + $0x4b] ss:$0 sm:$0xff]  ;;  %153 = vmatpush.msra.mxu1 %v135_v57 }
   0x8   :  { %96 = vmatpush.msra.mxu0 %v76_v27  ;;  %v133_v59 = vld [vmem:[%s313_s1 + $0x30] sm:$0xff]  ;;  %v132_v60 = vld [vmem:[%s313_s1 + $0x28] sm:$0xff] }
   0x9   :  { %154 = vmatpush.msra.mxu1 %v134_v58 }
   0xa   :  { %187 = vset.pattern.permute.xlu0 %v230_v2  ;;  %97 = vmatpush.msra.mxu0 %v75_v28 }
   0xb   :  { %23 = vperm.xlu0 %187, %v12_v0   ;;  %v198_v15 = vpop.eup %197  ;;  %155 = vmatpush.msra.mxu1 %v133_v59 }
   0xc   :  { %v40_v16 = vmul.f32 32.0, %v198_v15  ;;  %vm44_vm1 = vweird.f32 %v198_v15  ;;  %98 = vmatpush.msra.mxu0 %v74_v29 }
   0xd   :  { %156 = vmatpush.msra.mxu1 %v132_v60 }
   0xe   :  { %v41_v17 = vsub.f32 1.0, %v40_v16 }
  0x10   :  { %v42_v18 = vmul.f32 %v198_v15, %v41_v17 }
  0x12   :  { %v43_v19 = vadd.f32 %v198_v15, %v42_v18 }
  0x14   :  { %v45_v20 = vsel %vm44_vm1, %v198_v15, %v43_v19 }
  0x74   :  { %v17_v3 = vpop.permute.xlu0 %16 }
  0x75   :  { %v20_v7 = vmul.f32 %v188_v4, %v17_v3 }
  0x7d   :  { %v24_v6 = vpop.permute.xlu0 %23 }
  0x7e   :  { %v27_v8 = vmul.f32 %v189_v5, %v24_v6  ;;  %v194_v6 = vld [vmem:[%s313_s1 + $0x4c] ss:$0 sm:$0xff] }
  0x80   :  { %v28_v10 = vadd.f32 %v27_v8, %v20_v7 }
  0x82   :  { %v31_v11 = vadd.f32 %v190_v9, %v28_v10  ;;  %v195_v9 = vld [vmem:[%s313_s1 + $0x4d] ss:$0 sm:$0xff] }
  0x84   :  { %70 = vrot.lane.b32.xlu2 %v31_v11, %s231_s16  ;;  %v32_v12 = vmax.f32 %v31_v11, 0.0  ;;  %s233_s16 = smov [#allocation2]  }
  0x85   :  { %s168_s17 = sshll.u32 %s233_s16, 4  ;;  %s169_s17 = int_to_ptr.vmem [resolvable:$true] %s168_s17 }
  0x86   :  { %v36_v13 = vsel %vm35_vm0, %v32_v12, 0.0 }
  0x87   :  { %37 = vadd.xlane.f32.xlu1 %v36_v13 }
  0xde   :  { %v71_v45 = vpop.permute.xlu2 %70 }
  0xfa   :  { %v38_v21 = vpop.xlane.xlu1 %37 }
  0xfb   :  { %v46_v22 = vmul.f32 %v45_v20, %v38_v21 }
  0xfd   :  { %v47_v23 = vsub.f32 %v32_v12, %v46_v22  ;;  %v196_v12 = vld [vmem:[%s313_s1 + $0x4e] ss:$0 sm:$0xff] }
  0xff   :  { %v48_v24 = vmul.f32 %v47_v23, %v47_v23 }
 0x101   :  { %v49_v25 = vsel %vm35_vm0, %v48_v24, 0.0 }
 0x102   :  { %50 = vadd.xlane.f32.xlu1 %v49_v25 }
 0x175   :  { %v51_v30 = vpop.xlane.xlu1 %50 }
 0x176   :  { %v52_v31 = vmul.f32 %v51_v30, %v45_v20 }
 0x178   :  { %v53_v32 = vadd.f32 1e-05, %v52_v31 }
 0x17a   :  { %199 = vrsqrt.f32 %v53_v32  ;;  %vm60_vm3 = vweird.f32 %v53_v32 }
 0x180   :  { %v200_v33 = vpop.eup %199 }
 0x181   :  { %v55_v34 = vmul.f32 %v200_v33, %v53_v32  ;;  %vm61_vm2 = vweird.f32 %v200_v33 }
 0x182   :  { %vm62_vm4 = vmor %vm60_vm3, %vm61_vm2 }
 0x183   :  { %v56_v35 = vmul.f32 %v200_v33, %v55_v34 }
 0x185   :  { %v57_v36 = vmul.f32 0.5, %v56_v35 }
 0x187   :  { %v58_v37 = vsub.f32 1.5, %v57_v36 }
 0x189   :  { %v59_v38 = vmul.f32 %v200_v33, %v58_v37 }
 0x18b   :  { %v63_v40 = vsel %vm62_vm4, %v200_v33, %v59_v38 }
 0x18c   :  { %v64_v41 = vmul.f32 %v63_v40, %v47_v23 }
 0x18e   :  { %v66_v43 = vmul.f32 %v191_v39, %v64_v41 }
 0x190   :  { %v68_v44 = vadd.f32 %v192_v42, %v66_v43 }
 0x192   :  { %v73_v46 = vadd.f32 %v71_v45, %v68_v44 }
 0x194   :  { %179 = vmatmul.msk.f32.vlgmr.msra.gmra.mxu0 %vm35_vm0, %v73_v46 }
 0x211   :  { %v100_v48 = vpop.f32.mrf.mxu0 }
 0x212   :  { %v101_v49 = vadd.f32 %v193_v47, %v100_v48 }
 0x214   :  { %v103_v50 = vmax.f32 %v101_v49, 0.0 }
 0x216   :  { %v106_v51 = vsel %vm35_vm0, %v103_v50, 0.0 }
 0x217   :  { %107 = vadd.xlane.f32.xlu2 %v106_v51 }
 0x28a   :  { %v108_v52 = vpop.xlane.xlu2 %107 }
 0x28b   :  { %v109_v53 = vmul.f32 %v108_v52, %v45_v20 }
 0x28d   :  { %v110_v54 = vsub.f32 %v103_v50, %v109_v53 }
 0x28f   :  { %v111_v55 = vmul.f32 %v110_v54, %v110_v54 }
 0x291   :  { %v112_v56 = vsel %vm35_vm0, %v111_v55, 0.0 }
 0x292   :  { %113 = vadd.xlane.f32.xlu1 %v112_v56 }
 0x305   :  { %v114_v61 = vpop.xlane.xlu1 %113 }
 0x306   :  { %v115_v62 = vmul.f32 %v114_v61, %v45_v20 }
 0x308   :  { %v116_v63 = vadd.f32 1e-05, %v115_v62 }
 0x30a   :  { %201 = vrsqrt.f32 %v116_v63  ;;  %vm123_vm6 = vweird.f32 %v116_v63 }
 0x310   :  { %v202_v0 = vpop.eup %201 }
 0x311   :  { %v118_v1 = vmul.f32 %v202_v0, %v116_v63  ;;  %vm124_vm5 = vweird.f32 %v202_v0 }
 0x312   :  { %vm125_vm7 = vmor %vm123_vm6, %vm124_vm5 }
 0x313   :  { %v119_v2 = vmul.f32 %v202_v0, %v118_v1 }
 0x315   :  { %v120_v3 = vmul.f32 0.5, %v119_v2 }
 0x317   :  { %v121_v4 = vsub.f32 1.5, %v120_v3 }
 0x319   :  { %v122_v5 = vmul.f32 %v202_v0, %v121_v4 }
 0x31b   :  { %v126_v7 = vsel %vm125_vm7, %v202_v0, %v122_v5 }
 0x31c   :  { %v127_v8 = vmul.f32 %v126_v7, %v110_v54 }
 0x31e   :  { %v129_v10 = vmul.f32 %v194_v6, %v127_v8 }
 0x320   :  { %v131_v11 = vadd.f32 %v195_v9, %v129_v10 }
 0x322   :  { %180 = vmatmul.msk.f32.vlgmr.msra.gmra.mxu1 %vm35_vm0, %v131_v11 }
 0x39f   :  { %v158_v13 = vpop.f32.mrf.mxu1 }
 0x3a0   :  { %v159_v14 = vadd.f32 %v196_v12, %v158_v13 }
 0x3a2   :  { %162 = vst.msk [vmem:[#allocation2] sm:$0xff] %vm161_vm8, %v159_v14 }
 0x3a3   :  { %173 = dma.vmem_to_hbm [thread:$0]  %s169_s17, 128, %s171_s20, [#allocation3]  }
 0x3a4   :  { %227 = dma.done.wait [#allocation3], 128  }
 0x3a5   :  { %228 = vsyncadd [#allocation3], 4294967168 }
 0x3a6   :  { %178 = vsyncpa [#allocation3], 1 }

</bundles_post_ra>
